<compile_context>
chip_gen: v7x
topology: tpu7x:2x2x1
jax: 0.10.0
libtpu: 0.0.40
codegen_flags: <defaults>
</compile_context>

<pallas_src>
import functools

import jax
import jax.numpy as jnp
import numpy as np
from jax import lax
from jax.experimental import pallas as pl
from jax.experimental.pallas import tpu as pltpu

# ------------------------- config (from cfg/yolond) -------------------------
CLASS_NUM = 20      # int(d['classes'])
SIDE = 7            # S
NUM = 2             # B (boxes per cell)
COORD_SCALE = 5.0
NOOBJ_SCALE = 0.5

LANE = 128
SUBLANE = 8
CHUNK_ROWS = SUBLANE       # 8 rows x 128 lanes = 1024 cells per inner chunk
MAX_BLOCK_ROWS = 128       # 16384 cells -> ~2 MiB f32 per input per block


def _round_up(x, m):
    return ((x + m - 1) // m) * m


# --------------------------------- kernel -----------------------------------
def yolo_loss_kernel(pred_ref, label_ref, out_ref, *, side, num, class_num,
                     coord_scale, noobj_scale, chunk_rows):
    block_rows = pred_ref.shape[1]
    n_chunks = block_rows // chunk_rows
    s = 1.0 / side
    bbox = num * 5

    def chunk_partial(r0):
        # Channel c of the current 1024-cell chunk as a dense (8, 128) slab.
        def P(c):
            return pred_ref[c, pl.ds(r0, chunk_rows), :].astype(jnp.float32)

        def L(c):
            return label_ref[c, pl.ds(r0, chunk_rows), :].astype(jnp.float32)

        conf0 = L(4)
        obj_b = conf0 > 0.0                                # cell has an object
        obj_f = obj_b.astype(jnp.float32)
        noobj_w = noobj_scale * (conf0 == 0.0).astype(jnp.float32)

        # ---- class loss (object cells) ----
        csum = jnp.zeros((chunk_rows, LANE), jnp.float32)
        for c in range(bbox, bbox + class_num):
            d = P(c) - L(c)
            csum = csum + d * d
        cell = obj_f * csum

        # ---- label box 0 corners (IoU target) ----
        lx, ly, lw, lh = L(0), L(1), L(2), L(3)
        lxs, lys = lx * s, ly * s
        b2x1, b2x2 = lxs - 0.5 * lw, lxs + 0.5 * lw
        b2y1, b2y2 = lys - 0.5 * lh, lys + 0.5 * lh
        b2_area = (b2x2 - b2x1) * (b2y2 - b2y1)

        # ---- IoU of each predicted box vs the label box ----
        ious = []
        for b in range(num):
            o = b * 5
            px, py, pw, ph = P(o), P(o + 1), P(o + 2), P(o + 3)
            pxs, pys = px * s, py * s
            b1x1, b1x2 = pxs - 0.5 * pw, pxs + 0.5 * pw
            b1y1, b1y2 = pys - 0.5 * ph, pys + 0.5 * ph
            iw = jnp.maximum(jnp.minimum(b1x2, b2x2) - jnp.maximum(b1x1, b2x1), 0.0)
            ih = jnp.maximum(jnp.minimum(b1y2, b2y2) - jnp.maximum(b1y1, b2y1), 0.0)
            inter = iw * ih
            b1_area = (b1x2 - b1x1) * (b1y2 - b1y1)
            denom = b1_area + b2_area - inter
            # guard 0/0 (zero-padded / degenerate cells) -> IoU := 0
            safe = jnp.where(denom > 0.0, denom, 1.0)
            ious.append(jnp.where(denom > 0.0, inter / safe, 0.0))

        max_iou = ious[0]
        for b in range(1, num):
            max_iou = jnp.maximum(max_iou, ious[b])

        # first-occurrence argmax over the B boxes (matches torch/np tie-break)
        found = jnp.zeros_like(obj_b)
        resp = []
        for b in range(num):
            is_max = jnp.logical_and(ious[b] == max_iou, jnp.logical_not(found))
            resp.append(is_max)
            found = jnp.logical_or(found, is_max)

        # ---- per-box loss terms ----
        for b in range(num):
            o = b * 5
            px, py, pw, ph, pc = P(o), P(o + 1), P(o + 2), P(o + 3), P(o + 4)
            lxb, lyb, lwb, lhb, lcb = L(o), L(o + 1), L(o + 2), L(o + 3), L(o + 4)

            # no-object confidence loss (both confidence channels)
            dc = pc - lcb
            cell = cell + noobj_w * dc * dc

            # coord + sqrt(w/h) loss for the responsible box (where-guarded so
            # sqrt of non-responsible cells can never inject NaN)
            resp_b = jnp.logical_and(obj_b, resp[b])
            xy = (px - lxb) ** 2 + (py - lyb) ** 2
            wh = ((jnp.sqrt(pw) - jnp.sqrt(lwb)) ** 2
                  + (jnp.sqrt(ph) - jnp.sqrt(lhb)) ** 2)
            cell = cell + coord_scale * jnp.where(resp_b, xy + wh, 0.0)

            # confidence: responsible (vs IoU, x2) / not-responsible (vs 0)
            dpi = pc - max_iou
            cell = cell + obj_f * jnp.where(resp[b], 2.0 * dpi * dpi, pc * pc)

        return cell

    if n_chunks == 1:
        partial = chunk_partial(0)
    else:
        def body(j, acc):
            r0 = pl.multiple_of(j * chunk_rows, chunk_rows)
            return acc + chunk_partial(r0)

        partial = lax.fori_loop(0, n_chunks, body,
                                jnp.zeros((chunk_rows, LANE), jnp.float32))

    out_ref[0] = partial           # per-block (8,128) partial sum


# -------------------------------- wrapper ------------------------------------
def yolo_loss(preds, labels, *, side=SIDE, num=NUM, class_num=CLASS_NUM,
              coord_scale=COORD_SCALE, noobj_scale=NOOBJ_SCALE,
              max_block_rows=MAX_BLOCK_ROWS):
    N, S, S2, D = preds.shape
    assert S == S2 and D == num * 5 + class_num
    M = N * S * S
    C_PAD = _round_up(D, SUBLANE)              # 30 -> 32 channel slabs

    # keep bf16 inputs bf16 into the kernel (halves HBM bytes); otherwise f32
    work_dtype = (preds.dtype if preds.dtype in (jnp.bfloat16, jnp.float32)
                  else jnp.float32)
    preds = preds.astype(work_dtype)
    labels = labels.astype(work_dtype)

    # --- tile selection: pad the cell axis only as far as the blocks need.
    rows = pl.cdiv(M, LANE)                    # 128-cell rows
    rows8 = _round_up(rows, CHUNK_ROWS)
    n_blocks = pl.cdiv(rows8, max_block_rows)
    if rows8 >= 2 * CHUNK_ROWS:                # let v7x's 2 TCs split the grid
        n_blocks = max(n_blocks, 2)
    block_rows = _round_up(pl.cdiv(rows8, n_blocks), CHUNK_ROWS)
    rows_pad = n_blocks * block_rows
    M_pad = rows_pad * LANE

    # --- dense channel-major layout: (C_PAD, rows_pad, 128), zero padded.
    # TODO(synk): producing this layout upstream (or transposing per-tile
    # in-kernel on the idle XLU) would remove one extra HBM round trip.
    def relayout(x):
        x = jnp.pad(x.reshape(M, D).T, ((0, C_PAD - D), (0, M_pad - M)))
        return x.reshape(C_PAD, rows_pad, LANE)

    p3 = relayout(preds)
    l3 = relayout(labels)

    kernel = functools.partial(
        yolo_loss_kernel, side=side, num=num, class_num=class_num,
        coord_scale=coord_scale, noobj_scale=noobj_scale,
        chunk_rows=CHUNK_ROWS)

    block_bytes = C_PAD * block_rows * LANE * jnp.dtype(work_dtype).itemsize
    vmem_limit = int(min(48 << 20, max(16 << 20, 6 * block_bytes + (2 << 20))))

    partials = pl.pallas_call(
        kernel,
        out_shape=jax.ShapeDtypeStruct((n_blocks, CHUNK_ROWS, LANE), jnp.float32),
        grid=(n_blocks,),
        in_specs=[pl.BlockSpec((C_PAD, block_rows, LANE), lambda i: (0, i, 0)),
                  pl.BlockSpec((C_PAD, block_rows, LANE), lambda i: (0, i, 0))],
        out_specs=pl.BlockSpec((1, CHUNK_ROWS, LANE), lambda i: (i, 0, 0)),
        compiler_params=pltpu.CompilerParams(
            dimension_semantics=("parallel",),
            vmem_limit_bytes=vmem_limit),
    )(p3, l3)

    # tiny follow-up reduction + /batch (kept out of the kernel so the grid
    # axis stays race-free and fully parallel)
    return jnp.sum(partials) / N


# ---------------------- numpy reference (mirrors loss_1) ---------------------
def ref_loss(preds, labels, *, side=SIDE, num=NUM, class_num=CLASS_NUM,
             coord_scale=COORD_SCALE, noobj_scale=NOOBJ_SCALE):
    preds = np.asarray(preds, np.float32)
    labels = np.asarray(labels, np.float32)
    N = preds.shape[0]
    bbox_size = num * 5
    cell_size = bbox_size + class_num

    obj_mask = labels[..., 4] > 0
    noobj_mask = labels[..., 4] == 0

    obj_pred = preds[obj_mask].reshape(-1, cell_size)
    box_pred = obj_pred[:, :bbox_size].reshape(-1, 5)
    class_pred = obj_pred[:, bbox_size:]
    obj_label = labels[obj_mask].reshape(-1, cell_size)
    box_label = obj_label[:, :bbox_size].reshape(-1, 5)
    class_label = obj_label[:, bbox_size:]

    noobj_pred = preds[noobj_mask].reshape(-1, cell_size)
    noobj_label = labels[noobj_mask].reshape(-1, cell_size)
    conf_idx = [i * 5 + 4 for i in range(num)]
    noobj_loss = float(np.sum((noobj_pred[:, conf_idx] - noobj_label[:, conf_idx]) ** 2))

    s = 1.0 / side
    resp_idx, not_resp_idx = [], []
    max_ious = np.zeros(box_label.shape[0], np.float32)
    for i in range(0, box_label.shape[0], num):
        box1 = box_pred[i:i + num]
        b1 = np.zeros((num, 4), np.float32)
        b1[:, :2] = box1[:, :2] * s - 0.5 * box1[:, 2:4]
        b1[:, 2:4] = box1[:, :2] * s + 0.5 * box1[:, 2:4]
        box2 = box_label[i]
        b2 = np.zeros((1, 4), np.float32)
        b2[0, :2] = box2[:2] * s - 0.5 * box2[2:4]
        b2[0, 2:4] = box2[:2] * s + 0.5 * box2[2:4]
        ix1 = np.maximum(b1[:, 0], b2[:, 0])
        iy1 = np.maximum(b1[:, 1], b2[:, 1])
        ix2 = np.minimum(b1[:, 2], b2[:, 2])
        iy2 = np.minimum(b1[:, 3], b2[:, 3])
        inter = np.clip(ix2 - ix1, 0, None) * np.clip(iy2 - iy1, 0, None)
        a1 = (b1[:, 2] - b1[:, 0]) * (b1[:, 3] - b1[:, 1])
        a2 = (b2[:, 2] - b2[:, 0]) * (b2[:, 3] - b2[:, 1])
        iou = inter / (a1 + a2 - inter)
        mi = int(np.argmax(iou))
        resp_idx.append(i + mi)
        for b in range(num):
            if b != mi:
                not_resp_idx.append(i + b)
        max_ious[i + mi] = iou[mi]

    resp_idx = np.array(resp_idx, np.int64)
    not_resp_idx = np.array(not_resp_idx, np.int64)
    bp_r, bl_r = box_pred[resp_idx], box_label[resp_idx]
    response_loss = float(np.sum((bp_r[:, 4] - max_ious[resp_idx]) ** 2))
    xy_loss = float(np.sum((bp_r[:, :2] - bl_r[:, :2]) ** 2))
    wh_loss = float(np.sum((np.sqrt(bp_r[:, 2:4]) - np.sqrt(bl_r[:, 2:4])) ** 2))
    not_response_loss = float(np.sum(box_pred[not_resp_idx][:, 4] ** 2))
    class_loss = float(np.sum((class_pred - class_label) ** 2))

    total = (coord_scale * (xy_loss + wh_loss) + 2.0 * response_loss
             + not_response_loss + noobj_scale * noobj_loss + class_loss)
    return total / N


# ---------------------------------- main -------------------------------------
if __name__ == "__main__":
    key = jax.random.PRNGKey(0)

    def make_inputs(k, N):
        k1, k2, k3, k4 = jax.random.split(k, 4)
        S, D = SIDE, NUM * 5 + CLASS_NUM
        # predictions: positive values (sqrt of w/h must be real, as in ref)
        preds = jax.random.uniform(k1, (N, S, S, D), jnp.float32, 0.05, 0.95)
        # labels: positive geometry / classes; box-0 confidence is 0 (no obj)
        # or a positive score (object present).
        labels = jax.random.uniform(k2, (N, S, S, D), jnp.float32, 0.1, 0.9)
        has_obj = jax.random.bernoulli(k3, 0.5, (N, S, S))
        conf0 = jnp.where(has_obj,
                          jax.random.uniform(k4, (N, S, S), jnp.float32, 0.5, 1.0),
                          0.0)
        return preds, labels.at[..., 4].set(conf0)

    k_small, k_big = jax.random.split(key)

    # small case (batch=2): single grid block, single inner chunk
    preds, labels = make_inputs(k_small, 2)
    loss = yolo_loss(preds, labels)
    jax.block_until_ready(loss)
    expected = ref_loss(np.asarray(preds), np.asarray(labels))
    assert np.isclose(float(loss), expected, rtol=2e-4, atol=1e-3), (float(loss), expected)

    # moderate case (batch=48): exercises the parallel grid + inner chunk loop
    preds_b, labels_b = make_inputs(k_big, 48)
    loss_b = yolo_loss(preds_b, labels_b)
    jax.block_until_ready(loss_b)
    expected_b = ref_loss(np.asarray(preds_b), np.asarray(labels_b))
    assert np.isclose(float(loss_b), expected_b, rtol=2e-4, atol=1e-3), (float(loss_b), expected_b)

    print("KERNEL_OK")
</pallas_src>

<mosaic_0001>
module attributes {stable_mosaic.version = 11 : i64} {
  func.func @yolo_loss_kernel(%arg0: i32, %arg1: memref<32x8x128xf32, #tpu.memory_space<vmem>>, %arg2: memref<32x8x128xf32, #tpu.memory_space<vmem>>, %arg3: memref<1x8x128xf32, #tpu.memory_space<vmem>>) attributes {dimension_semantics = [#tpu.dimension_semantics<parallel>], iteration_bounds = array<i64: 1>, scalar_prefetch = 0 : i64, scratch_operands = 0 : i64, tpu.core_type = #tpu.core_type<tc>, window_params = [{transform_indices = @transform_0, window_bounds = array<i64: 32, 8, 128>}, {transform_indices = @transform_1, window_bounds = array<i64: 32, 8, 128>}, {transform_indices = @transform_2, window_bounds = array<i64: 1, 8, 128>}]} {
    %c4 = arith.constant 4 : index
    %c0 = arith.constant 0 : index
    %c0_0 = arith.constant 0 : index
    %0 = vector.load %arg2[%c4, %c0, %c0_0] : memref<32x8x128xf32, #tpu.memory_space<vmem>>, vector<1x8x128xf32>
    %1 = vector.shape_cast %0 : vector<1x8x128xf32> to vector<8x128xf32>
    %cst = arith.constant 0.000000e+00 : f32
    %2 = vector.broadcast %cst : f32 to vector<8x128xf32>
    %3 = arith.cmpf ogt, %1, %2 : vector<8x128xf32>
    %4 = arith.extui %3 : vector<8x128xi1> to vector<8x128xi32>
    %5 = arith.sitofp %4 : vector<8x128xi32> to vector<8x128xf32>
    %cst_1 = arith.constant 0.000000e+00 : f32
    %6 = vector.broadcast %cst_1 : f32 to vector<8x128xf32>
    %7 = arith.cmpf oeq, %1, %6 : vector<8x128xf32>
    %8 = arith.extui %7 : vector<8x128xi1> to vector<8x128xi32>
    %9 = arith.sitofp %8 : vector<8x128xi32> to vector<8x128xf32>
    %cst_2 = arith.constant 5.000000e-01 : f32
    %10 = vector.broadcast %cst_2 : f32 to vector<8x128xf32>
    %11 = arith.mulf %10, %9 : vector<8x128xf32>
    %cst_3 = arith.constant 0.000000e+00 : f32
    %12 = vector.broadcast %cst_3 : f32 to vector<8x128xf32>
    %c10 = arith.constant 10 : index
    %c0_4 = arith.constant 0 : index
    %c0_5 = arith.constant 0 : index
    %13 = vector.load %arg1[%c10, %c0_4, %c0_5] : memref<32x8x128xf32, #tpu.memory_space<vmem>>, vector<1x8x128xf32>
    %14 = vector.shape_cast %13 : vector<1x8x128xf32> to vector<8x128xf32>
    %c10_6 = arith.constant 10 : index
    %c0_7 = arith.constant 0 : index
    %c0_8 = arith.constant 0 : index
    %15 = vector.load %arg2[%c10_6, %c0_7, %c0_8] : memref<32x8x128xf32, #tpu.memory_space<vmem>>, vector<1x8x128xf32>
    %16 = vector.shape_cast %15 : vector<1x8x128xf32> to vector<8x128xf32>
    %17 = arith.subf %14, %16 : vector<8x128xf32>
    %18 = arith.mulf %17, %17 : vector<8x128xf32>
    %19 = arith.addf %12, %18 : vector<8x128xf32>
    %c11 = arith.constant 11 : index
    %c0_9 = arith.constant 0 : index
    %c0_10 = arith.constant 0 : index
    %20 = vector.load %arg1[%c11, %c0_9, %c0_10] : memref<32x8x128xf32, #tpu.memory_space<vmem>>, vector<1x8x128xf32>
    %21 = vector.shape_cast %20 : vector<1x8x128xf32> to vector<8x128xf32>
    %c11_11 = arith.constant 11 : index
    %c0_12 = arith.constant 0 : index
    %c0_13 = arith.constant 0 : index
    %22 = vector.load %arg2[%c11_11, %c0_12, %c0_13] : memref<32x8x128xf32, #tpu.memory_space<vmem>>, vector<1x8x128xf32>
    %23 = vector.shape_cast %22 : vector<1x8x128xf32> to vector<8x128xf32>
    %24 = arith.subf %21, %23 : vector<8x128xf32>
    %25 = arith.mulf %24, %24 : vector<8x128xf32>
    %26 = arith.addf %19, %25 : vector<8x128xf32>
    %c12 = arith.constant 12 : index
    %c0_14 = arith.constant 0 : index
    %c0_15 = arith.constant 0 : index
    %27 = vector.load %arg1[%c12, %c0_14, %c0_15] : memref<32x8x128xf32, #tpu.memory_space<vmem>>, vector<1x8x128xf32>
    %28 = vector.shape_cast %27 : vector<1x8x128xf32> to vector<8x128xf32>
    %c12_16 = arith.constant 12 : index
    %c0_17 = arith.constant 0 : index
    %c0_18 = arith.constant 0 : index
    %29 = vector.load %arg2[%c12_16, %c0_17, %c0_18] : memref<32x8x128xf32, #tpu.memory_space<vmem>>, vector<1x8x128xf32>
    %30 = vector.shape_cast %29 : vector<1x8x128xf32> to vector<8x128xf32>
    %31 = arith.subf %28, %30 : vector<8x128xf32>
    %32 = arith.mulf %31, %31 : vector<8x128xf32>
    %33 = arith.addf %26, %32 : vector<8x128xf32>
    %c13 = arith.constant 13 : index
    %c0_19 = arith.constant 0 : index
    %c0_20 = arith.constant 0 : index
    %34 = vector.load %arg1[%c13, %c0_19, %c0_20] : memref<32x8x128xf32, #tpu.memory_space<vmem>>, vector<1x8x128xf32>
    %35 = vector.shape_cast %34 : vector<1x8x128xf32> to vector<8x128xf32>
    %c13_21 = arith.constant 13 : index
    %c0_22 = arith.constant 0 : index
    %c0_23 = arith.constant 0 : index
    %36 = vector.load %arg2[%c13_21, %c0_22, %c0_23] : memref<32x8x128xf32, #tpu.memory_space<vmem>>, vector<1x8x128xf32>
    %37 = vector.shape_cast %36 : vector<1x8x128xf32> to vector<8x128xf32>
    %38 = arith.subf %35, %37 : vector<8x128xf32>
    %39 = arith.mulf %38, %38 : vector<8x128xf32>
    %40 = arith.addf %33, %39 : vector<8x128xf32>
    %c14 = arith.constant 14 : index
    %c0_24 = arith.constant 0 : index
    %c0_25 = arith.constant 0 : index
    %41 = vector.load %arg1[%c14, %c0_24, %c0_25] : memref<32x8x128xf32, #tpu.memory_space<vmem>>, vector<1x8x128xf32>
    %42 = vector.shape_cast %41 : vector<1x8x128xf32> to vector<8x128xf32>
    %c14_26 = arith.constant 14 : index
    %c0_27 = arith.constant 0 : index
    %c0_28 = arith.constant 0 : index
    %43 = vector.load %arg2[%c14_26, %c0_27, %c0_28] : memref<32x8x128xf32, #tpu.memory_space<vmem>>, vector<1x8x128xf32>
    %44 = vector.shape_cast %43 : vector<1x8x128xf32> to vector<8x128xf32>
    %45 = arith.subf %42, %44 : vector<8x128xf32>
    %46 = arith.mulf %45, %45 : vector<8x128xf32>
    %47 = arith.addf %40, %46 : vector<8x128xf32>
    %c15 = arith.constant 15 : index
    %c0_29 = arith.constant 0 : index
    %c0_30 = arith.constant 0 : index
    %48 = vector.load %arg1[%c15, %c0_29, %c0_30] : memref<32x8x128xf32, #tpu.memory_space<vmem>>, vector<1x8x128xf32>
    %49 = vector.shape_cast %48 : vector<1x8x128xf32> to vector<8x128xf32>
    %c15_31 = arith.constant 15 : index
    %c0_32 = arith.constant 0 : index
    %c0_33 = arith.constant 0 : index
    %50 = vector.load %arg2[%c15_31, %c0_32, %c0_33] : memref<32x8x128xf32, #tpu.memory_space<vmem>>, vector<1x8x128xf32>
    %51 = vector.shape_cast %50 : vector<1x8x128xf32> to vector<8x128xf32>
    %52 = arith.subf %49, %51 : vector<8x128xf32>
    %53 = arith.mulf %52, %52 : vector<8x128xf32>
    %54 = arith.addf %47, %53 : vector<8x128xf32>
    %c16 = arith.constant 16 : index
    %c0_34 = arith.constant 0 : index
    %c0_35 = arith.constant 0 : index
    %55 = vector.load %arg1[%c16, %c0_34, %c0_35] : memref<32x8x128xf32, #tpu.memory_space<vmem>>, vector<1x8x128xf32>
    %56 = vector.shape_cast %55 : vector<1x8x128xf32> to vector<8x128xf32>
    %c16_36 = arith.constant 16 : index
    %c0_37 = arith.constant 0 : index
    %c0_38 = arith.constant 0 : index
    %57 = vector.load %arg2[%c16_36, %c0_37, %c0_38] : memref<32x8x128xf32, #tpu.memory_space<vmem>>, vector<1x8x128xf32>
    %58 = vector.shape_cast %57 : vector<1x8x128xf32> to vector<8x128xf32>
    %59 = arith.subf %56, %58 : vector<8x128xf32>
    %60 = arith.mulf %59, %59 : vector<8x128xf32>
    %61 = arith.addf %54, %60 : vector<8x128xf32>
    %c17 = arith.constant 17 : index
    %c0_39 = arith.constant 0 : index
    %c0_40 = arith.constant 0 : index
    %62 = vector.load %arg1[%c17, %c0_39, %c0_40] : memref<32x8x128xf32, #tpu.memory_space<vmem>>, vector<1x8x128xf32>
    %63 = vector.shape_cast %62 : vector<1x8x128xf32> to vector<8x128xf32>
    %c17_41 = arith.constant 17 : index
    %c0_42 = arith.constant 0 : index
    %c0_43 = arith.constant 0 : index
    %64 = vector.load %arg2[%c17_41, %c0_42, %c0_43] : memref<32x8x128xf32, #tpu.memory_space<vmem>>, vector<1x8x128xf32>
    %65 = vector.shape_cast %64 : vector<1x8x128xf32> to vector<8x128xf32>
    %66 = arith.subf %63, %65 : vector<8x128xf32>
    %67 = arith.mulf %66, %66 : vector<8x128xf32>
    %68 = arith.addf %61, %67 : vector<8x128xf32>
    %c18 = arith.constant 18 : index
    %c0_44 = arith.constant 0 : index
    %c0_45 = arith.constant 0 : index
    %69 = vector.load %arg1[%c18, %c0_44, %c0_45] : memref<32x8x128xf32, #tpu.memory_space<vmem>>, vector<1x8x128xf32>
    %70 = vector.shape_cast %69 : vector<1x8x128xf32> to vector<8x128xf32>
    %c18_46 = arith.constant 18 : index
    %c0_47 = arith.constant 0 : index
    %c0_48 = arith.constant 0 : index
    %71 = vector.load %arg2[%c18_46, %c0_47, %c0_48] : memref<32x8x128xf32, #tpu.memory_space<vmem>>, vector<1x8x128xf32>
    %72 = vector.shape_cast %71 : vector<1x8x128xf32> to vector<8x128xf32>
    %73 = arith.subf %70, %72 : vector<8x128xf32>
    %74 = arith.mulf %73, %73 : vector<8x128xf32>
    %75 = arith.addf %68, %74 : vector<8x128xf32>
    %c19 = arith.constant 19 : index
    %c0_49 = arith.constant 0 : index
    %c0_50 = arith.constant 0 : index
    %76 = vector.load %arg1[%c19, %c0_49, %c0_50] : memref<32x8x128xf32, #tpu.memory_space<vmem>>, vector<1x8x128xf32>
    %77 = vector.shape_cast %76 : vector<1x8x128xf32> to vector<8x128xf32>
    %c19_51 = arith.constant 19 : index
    %c0_52 = arith.constant 0 : index
    %c0_53 = arith.constant 0 : index
    %78 = vector.load %arg2[%c19_51, %c0_52, %c0_53] : memref<32x8x128xf32, #tpu.memory_space<vmem>>, vector<1x8x128xf32>
    %79 = vector.shape_cast %78 : vector<1x8x128xf32> to vector<8x128xf32>
    %80 = arith.subf %77, %79 : vector<8x128xf32>
    %81 = arith.mulf %80, %80 : vector<8x128xf32>
    %82 = arith.addf %75, %81 : vector<8x128xf32>
    %c20 = arith.constant 20 : index
    %c0_54 = arith.constant 0 : index
    %c0_55 = arith.constant 0 : index
    %83 = vector.load %arg1[%c20, %c0_54, %c0_55] : memref<32x8x128xf32, #tpu.memory_space<vmem>>, vector<1x8x128xf32>
    %84 = vector.shape_cast %83 : vector<1x8x128xf32> to vector<8x128xf32>
    %c20_56 = arith.constant 20 : index
    %c0_57 = arith.constant 0 : index
    %c0_58 = arith.constant 0 : index
    %85 = vector.load %arg2[%c20_56, %c0_57, %c0_58] : memref<32x8x128xf32, #tpu.memory_space<vmem>>, vector<1x8x128xf32>
    %86 = vector.shape_cast %85 : vector<1x8x128xf32> to vector<8x128xf32>
    %87 = arith.subf %84, %86 : vector<8x128xf32>
    %88 = arith.mulf %87, %87 : vector<8x128xf32>
    %89 = arith.addf %82, %88 : vector<8x128xf32>
    %c21 = arith.constant 21 : index
    %c0_59 = arith.constant 0 : index
    %c0_60 = arith.constant 0 : index
    %90 = vector.load %arg1[%c21, %c0_59, %c0_60] : memref<32x8x128xf32, #tpu.memory_space<vmem>>, vector<1x8x128xf32>
    %91 = vector.shape_cast %90 : vector<1x8x128xf32> to vector<8x128xf32>
    %c21_61 = arith.constant 21 : index
    %c0_62 = arith.constant 0 : index
    %c0_63 = arith.constant 0 : index
    %92 = vector.load %arg2[%c21_61, %c0_62, %c0_63] : memref<32x8x128xf32, #tpu.memory_space<vmem>>, vector<1x8x128xf32>
    %93 = vector.shape_cast %92 : vector<1x8x128xf32> to vector<8x128xf32>
    %94 = arith.subf %91, %93 : vector<8x128xf32>
    %95 = arith.mulf %94, %94 : vector<8x128xf32>
    %96 = arith.addf %89, %95 : vector<8x128xf32>
    %c22 = arith.constant 22 : index
    %c0_64 = arith.constant 0 : index
    %c0_65 = arith.constant 0 : index
    %97 = vector.load %arg1[%c22, %c0_64, %c0_65] : memref<32x8x128xf32, #tpu.memory_space<vmem>>, vector<1x8x128xf32>
    %98 = vector.shape_cast %97 : vector<1x8x128xf32> to vector<8x128xf32>
    %c22_66 = arith.constant 22 : index
    %c0_67 = arith.constant 0 : index
    %c0_68 = arith.constant 0 : index
    %99 = vector.load %arg2[%c22_66, %c0_67, %c0_68] : memref<32x8x128xf32, #tpu.memory_space<vmem>>, vector<1x8x128xf32>
    %100 = vector.shape_cast %99 : vector<1x8x128xf32> to vector<8x128xf32>
    %101 = arith.subf %98, %100 : vector<8x128xf32>
    %102 = arith.mulf %101, %101 : vector<8x128xf32>
    %103 = arith.addf %96, %102 : vector<8x128xf32>
    %c23 = arith.constant 23 : index
    %c0_69 = arith.constant 0 : index
    %c0_70 = arith.constant 0 : index
    %104 = vector.load %arg1[%c23, %c0_69, %c0_70] : memref<32x8x128xf32, #tpu.memory_space<vmem>>, vector<1x8x128xf32>
    %105 = vector.shape_cast %104 : vector<1x8x128xf32> to vector<8x128xf32>
    %c23_71 = arith.constant 23 : index
    %c0_72 = arith.constant 0 : index
    %c0_73 = arith.constant 0 : index
    %106 = vector.load %arg2[%c23_71, %c0_72, %c0_73] : memref<32x8x128xf32, #tpu.memory_space<vmem>>, vector<1x8x128xf32>
    %107 = vector.shape_cast %106 : vector<1x8x128xf32> to vector<8x128xf32>
    %108 = arith.subf %105, %107 : vector<8x128xf32>
    %109 = arith.mulf %108, %108 : vector<8x128xf32>
    %110 = arith.addf %103, %109 : vector<8x128xf32>
    %c24 = arith.constant 24 : index
    %c0_74 = arith.constant 0 : index
    %c0_75 = arith.constant 0 : index
    %111 = vector.load %arg1[%c24, %c0_74, %c0_75] : memref<32x8x128xf32, #tpu.memory_space<vmem>>, vector<1x8x128xf32>
    %112 = vector.shape_cast %111 : vector<1x8x128xf32> to vector<8x128xf32>
    %c24_76 = arith.constant 24 : index
    %c0_77 = arith.constant 0 : index
    %c0_78 = arith.constant 0 : index
    %113 = vector.load %arg2[%c24_76, %c0_77, %c0_78] : memref<32x8x128xf32, #tpu.memory_space<vmem>>, vector<1x8x128xf32>
    %114 = vector.shape_cast %113 : vector<1x8x128xf32> to vector<8x128xf32>
    %115 = arith.subf %112, %114 : vector<8x128xf32>
    %116 = arith.mulf %115, %115 : vector<8x128xf32>
    %117 = arith.addf %110, %116 : vector<8x128xf32>
    %c25 = arith.constant 25 : index
    %c0_79 = arith.constant 0 : index
    %c0_80 = arith.constant 0 : index
    %118 = vector.load %arg1[%c25, %c0_79, %c0_80] : memref<32x8x128xf32, #tpu.memory_space<vmem>>, vector<1x8x128xf32>
    %119 = vector.shape_cast %118 : vector<1x8x128xf32> to vector<8x128xf32>
    %c25_81 = arith.constant 25 : index
    %c0_82 = arith.constant 0 : index
    %c0_83 = arith.constant 0 : index
    %120 = vector.load %arg2[%c25_81, %c0_82, %c0_83] : memref<32x8x128xf32, #tpu.memory_space<vmem>>, vector<1x8x128xf32>
    %121 = vector.shape_cast %120 : vector<1x8x128xf32> to vector<8x128xf32>
    %122 = arith.subf %119, %121 : vector<8x128xf32>
    %123 = arith.mulf %122, %122 : vector<8x128xf32>
    %124 = arith.addf %117, %123 : vector<8x128xf32>
    %c26 = arith.constant 26 : index
    %c0_84 = arith.constant 0 : index
    %c0_85 = arith.constant 0 : index
    %125 = vector.load %arg1[%c26, %c0_84, %c0_85] : memref<32x8x128xf32, #tpu.memory_space<vmem>>, vector<1x8x128xf32>
    %126 = vector.shape_cast %125 : vector<1x8x128xf32> to vector<8x128xf32>
    %c26_86 = arith.constant 26 : index
    %c0_87 = arith.constant 0 : index
    %c0_88 = arith.constant 0 : index
    %127 = vector.load %arg2[%c26_86, %c0_87, %c0_88] : memref<32x8x128xf32, #tpu.memory_space<vmem>>, vector<1x8x128xf32>
    %128 = vector.shape_cast %127 : vector<1x8x128xf32> to vector<8x128xf32>
    %129 = arith.subf %126, %128 : vector<8x128xf32>
    %130 = arith.mulf %129, %129 : vector<8x128xf32>
    %131 = arith.addf %124, %130 : vector<8x128xf32>
    %c27 = arith.constant 27 : index
    %c0_89 = arith.constant 0 : index
    %c0_90 = arith.constant 0 : index
    %132 = vector.load %arg1[%c27, %c0_89, %c0_90] : memref<32x8x128xf32, #tpu.memory_space<vmem>>, vector<1x8x128xf32>
    %133 = vector.shape_cast %132 : vector<1x8x128xf32> to vector<8x128xf32>
    %c27_91 = arith.constant 27 : index
    %c0_92 = arith.constant 0 : index
    %c0_93 = arith.constant 0 : index
    %134 = vector.load %arg2[%c27_91, %c0_92, %c0_93] : memref<32x8x128xf32, #tpu.memory_space<vmem>>, vector<1x8x128xf32>
    %135 = vector.shape_cast %134 : vector<1x8x128xf32> to vector<8x128xf32>
    %136 = arith.subf %133, %135 : vector<8x128xf32>
    %137 = arith.mulf %136, %136 : vector<8x128xf32>
    %138 = arith.addf %131, %137 : vector<8x128xf32>
    %c28 = arith.constant 28 : index
    %c0_94 = arith.constant 0 : index
    %c0_95 = arith.constant 0 : index
    %139 = vector.load %arg1[%c28, %c0_94, %c0_95] : memref<32x8x128xf32, #tpu.memory_space<vmem>>, vector<1x8x128xf32>
    %140 = vector.shape_cast %139 : vector<1x8x128xf32> to vector<8x128xf32>
    %c28_96 = arith.constant 28 : index
    %c0_97 = arith.constant 0 : index
    %c0_98 = arith.constant 0 : index
    %141 = vector.load %arg2[%c28_96, %c0_97, %c0_98] : memref<32x8x128xf32, #tpu.memory_space<vmem>>, vector<1x8x128xf32>
    %142 = vector.shape_cast %141 : vector<1x8x128xf32> to vector<8x128xf32>
    %143 = arith.subf %140, %142 : vector<8x128xf32>
    %144 = arith.mulf %143, %143 : vector<8x128xf32>
    %145 = arith.addf %138, %144 : vector<8x128xf32>
    %c29 = arith.constant 29 : index
    %c0_99 = arith.constant 0 : index
    %c0_100 = arith.constant 0 : index
    %146 = vector.load %arg1[%c29, %c0_99, %c0_100] : memref<32x8x128xf32, #tpu.memory_space<vmem>>, vector<1x8x128xf32>
    %147 = vector.shape_cast %146 : vector<1x8x128xf32> to vector<8x128xf32>
    %c29_101 = arith.constant 29 : index
    %c0_102 = arith.constant 0 : index
    %c0_103 = arith.constant 0 : index
    %148 = vector.load %arg2[%c29_101, %c0_102, %c0_103] : memref<32x8x128xf32, #tpu.memory_space<vmem>>, vector<1x8x128xf32>
    %149 = vector.shape_cast %148 : vector<1x8x128xf32> to vector<8x128xf32>
    %150 = arith.subf %147, %149 : vector<8x128xf32>
    %151 = arith.mulf %150, %150 : vector<8x128xf32>
    %152 = arith.addf %145, %151 : vector<8x128xf32>
    %153 = arith.mulf %5, %152 : vector<8x128xf32>
    %c0_104 = arith.constant 0 : index
    %c0_105 = arith.constant 0 : index
    %c0_106 = arith.constant 0 : index
    %154 = vector.load %arg2[%c0_104, %c0_105, %c0_106] : memref<32x8x128xf32, #tpu.memory_space<vmem>>, vector<1x8x128xf32>
    %155 = vector.shape_cast %154 : vector<1x8x128xf32> to vector<8x128xf32>
    %c1 = arith.constant 1 : index
    %c0_107 = arith.constant 0 : index
    %c0_108 = arith.constant 0 : index
    %156 = vector.load %arg2[%c1, %c0_107, %c0_108] : memref<32x8x128xf32, #tpu.memory_space<vmem>>, vector<1x8x128xf32>
    %157 = vector.shape_cast %156 : vector<1x8x128xf32> to vector<8x128xf32>
    %c2 = arith.constant 2 : index
    %c0_109 = arith.constant 0 : index
    %c0_110 = arith.constant 0 : index
    %158 = vector.load %arg2[%c2, %c0_109, %c0_110] : memref<32x8x128xf32, #tpu.memory_space<vmem>>, vector<1x8x128xf32>
    %159 = vector.shape_cast %158 : vector<1x8x128xf32> to vector<8x128xf32>
    %c3 = arith.constant 3 : index
    %c0_111 = arith.constant 0 : index
    %c0_112 = arith.constant 0 : index
    %160 = vector.load %arg2[%c3, %c0_111, %c0_112] : memref<32x8x128xf32, #tpu.memory_space<vmem>>, vector<1x8x128xf32>
    %161 = vector.shape_cast %160 : vector<1x8x128xf32> to vector<8x128xf32>
    %cst_113 = arith.constant 0.142857149 : f32
    %162 = vector.broadcast %cst_113 : f32 to vector<8x128xf32>
    %163 = arith.mulf %155, %162 : vector<8x128xf32>
    %cst_114 = arith.constant 0.142857149 : f32
    %164 = vector.broadcast %cst_114 : f32 to vector<8x128xf32>
    %165 = arith.mulf %157, %164 : vector<8x128xf32>
    %cst_115 = arith.constant 5.000000e-01 : f32
    %166 = vector.broadcast %cst_115 : f32 to vector<8x128xf32>
    %167 = arith.mulf %166, %159 : vector<8x128xf32>
    %168 = arith.subf %163, %167 : vector<8x128xf32>
    %cst_116 = arith.constant 5.000000e-01 : f32
    %169 = vector.broadcast %cst_116 : f32 to vector<8x128xf32>
    %170 = arith.mulf %169, %159 : vector<8x128xf32>
    %171 = arith.addf %163, %170 : vector<8x128xf32>
    %cst_117 = arith.constant 5.000000e-01 : f32
    %172 = vector.broadcast %cst_117 : f32 to vector<8x128xf32>
    %173 = arith.mulf %172, %161 : vector<8x128xf32>
    %174 = arith.subf %165, %173 : vector<8x128xf32>
    %cst_118 = arith.constant 5.000000e-01 : f32
    %175 = vector.broadcast %cst_118 : f32 to vector<8x128xf32>
    %176 = arith.mulf %175, %161 : vector<8x128xf32>
    %177 = arith.addf %165, %176 : vector<8x128xf32>
    %178 = arith.subf %171, %168 : vector<8x128xf32>
    %179 = arith.subf %177, %174 : vector<8x128xf32>
    %180 = arith.mulf %178, %179 : vector<8x128xf32>
    %c0_119 = arith.constant 0 : index
    %c0_120 = arith.constant 0 : index
    %c0_121 = arith.constant 0 : index
    %181 = vector.load %arg1[%c0_119, %c0_120, %c0_121] : memref<32x8x128xf32, #tpu.memory_space<vmem>>, vector<1x8x128xf32>
    %182 = vector.shape_cast %181 : vector<1x8x128xf32> to vector<8x128xf32>
    %c1_122 = arith.constant 1 : index
    %c0_123 = arith.constant 0 : index
    %c0_124 = arith.constant 0 : index
    %183 = vector.load %arg1[%c1_122, %c0_123, %c0_124] : memref<32x8x128xf32, #tpu.memory_space<vmem>>, vector<1x8x128xf32>
    %184 = vector.shape_cast %183 : vector<1x8x128xf32> to vector<8x128xf32>
    %c2_125 = arith.constant 2 : index
    %c0_126 = arith.constant 0 : index
    %c0_127 = arith.constant 0 : index
    %185 = vector.load %arg1[%c2_125, %c0_126, %c0_127] : memref<32x8x128xf32, #tpu.memory_space<vmem>>, vector<1x8x128xf32>
    %186 = vector.shape_cast %185 : vector<1x8x128xf32> to vector<8x128xf32>
    %c3_128 = arith.constant 3 : index
    %c0_129 = arith.constant 0 : index
    %c0_130 = arith.constant 0 : index
    %187 = vector.load %arg1[%c3_128, %c0_129, %c0_130] : memref<32x8x128xf32, #tpu.memory_space<vmem>>, vector<1x8x128xf32>
    %188 = vector.shape_cast %187 : vector<1x8x128xf32> to vector<8x128xf32>
    %cst_131 = arith.constant 0.142857149 : f32
    %189 = vector.broadcast %cst_131 : f32 to vector<8x128xf32>
    %190 = arith.mulf %182, %189 : vector<8x128xf32>
    %cst_132 = arith.constant 0.142857149 : f32
    %191 = vector.broadcast %cst_132 : f32 to vector<8x128xf32>
    %192 = arith.mulf %184, %191 : vector<8x128xf32>
    %cst_133 = arith.constant 5.000000e-01 : f32
    %193 = vector.broadcast %cst_133 : f32 to vector<8x128xf32>
    %194 = arith.mulf %193, %186 : vector<8x128xf32>
    %195 = arith.subf %190, %194 : vector<8x128xf32>
    %cst_134 = arith.constant 5.000000e-01 : f32
    %196 = vector.broadcast %cst_134 : f32 to vector<8x128xf32>
    %197 = arith.mulf %196, %186 : vector<8x128xf32>
    %198 = arith.addf %190, %197 : vector<8x128xf32>
    %cst_135 = arith.constant 5.000000e-01 : f32
    %199 = vector.broadcast %cst_135 : f32 to vector<8x128xf32>
    %200 = arith.mulf %199, %188 : vector<8x128xf32>
    %201 = arith.subf %192, %200 : vector<8x128xf32>
    %cst_136 = arith.constant 5.000000e-01 : f32
    %202 = vector.broadcast %cst_136 : f32 to vector<8x128xf32>
    %203 = arith.mulf %202, %188 : vector<8x128xf32>
    %204 = arith.addf %192, %203 : vector<8x128xf32>
    %205 = arith.minimumf %198, %171 : vector<8x128xf32>
    %206 = arith.maximumf %195, %168 : vector<8x128xf32>
    %207 = arith.subf %205, %206 : vector<8x128xf32>
    %cst_137 = arith.constant 0.000000e+00 : f32
    %208 = vector.broadcast %cst_137 : f32 to vector<8x128xf32>
    %209 = arith.maximumf %207, %208 : vector<8x128xf32>
    %210 = arith.minimumf %204, %177 : vector<8x128xf32>
    %211 = arith.maximumf %201, %174 : vector<8x128xf32>
    %212 = arith.subf %210, %211 : vector<8x128xf32>
    %cst_138 = arith.constant 0.000000e+00 : f32
    %213 = vector.broadcast %cst_138 : f32 to vector<8x128xf32>
    %214 = arith.maximumf %212, %213 : vector<8x128xf32>
    %215 = arith.mulf %209, %214 : vector<8x128xf32>
    %216 = arith.subf %198, %195 : vector<8x128xf32>
    %217 = arith.subf %204, %201 : vector<8x128xf32>
    %218 = arith.mulf %216, %217 : vector<8x128xf32>
    %219 = arith.addf %218, %180 : vector<8x128xf32>
    %220 = arith.subf %219, %215 : vector<8x128xf32>
    %cst_139 = arith.constant 0.000000e+00 : f32
    %221 = vector.broadcast %cst_139 : f32 to vector<8x128xf32>
    %222 = arith.cmpf ogt, %220, %221 : vector<8x128xf32>
    %cst_140 = arith.constant 1.000000e+00 : f32
    %223 = vector.broadcast %cst_140 : f32 to vector<8x128xf32>
    %224 = arith.select %222, %220, %223 : vector<8x128xi1>, vector<8x128xf32>
    %cst_141 = arith.constant 0.000000e+00 : f32
    %225 = vector.broadcast %cst_141 : f32 to vector<8x128xf32>
    %226 = arith.cmpf ogt, %220, %225 : vector<8x128xf32>
    %227 = arith.divf %215, %224 : vector<8x128xf32>
    %cst_142 = arith.constant 0.000000e+00 : f32
    %228 = vector.broadcast %cst_142 : f32 to vector<8x128xf32>
    %229 = arith.select %226, %227, %228 : vector<8x128xi1>, vector<8x128xf32>
    %c5 = arith.constant 5 : index
    %c0_143 = arith.constant 0 : index
    %c0_144 = arith.constant 0 : index
    %230 = vector.load %arg1[%c5, %c0_143, %c0_144] : memref<32x8x128xf32, #tpu.memory_space<vmem>>, vector<1x8x128xf32>
    %231 = vector.shape_cast %230 : vector<1x8x128xf32> to vector<8x128xf32>
    %c6 = arith.constant 6 : index
    %c0_145 = arith.constant 0 : index
    %c0_146 = arith.constant 0 : index
    %232 = vector.load %arg1[%c6, %c0_145, %c0_146] : memref<32x8x128xf32, #tpu.memory_space<vmem>>, vector<1x8x128xf32>
    %233 = vector.shape_cast %232 : vector<1x8x128xf32> to vector<8x128xf32>
    %c7 = arith.constant 7 : index
    %c0_147 = arith.constant 0 : index
    %c0_148 = arith.constant 0 : index
    %234 = vector.load %arg1[%c7, %c0_147, %c0_148] : memref<32x8x128xf32, #tpu.memory_space<vmem>>, vector<1x8x128xf32>
    %235 = vector.shape_cast %234 : vector<1x8x128xf32> to vector<8x128xf32>
    %c8 = arith.constant 8 : index
    %c0_149 = arith.constant 0 : index
    %c0_150 = arith.constant 0 : index
    %236 = vector.load %arg1[%c8, %c0_149, %c0_150] : memref<32x8x128xf32, #tpu.memory_space<vmem>>, vector<1x8x128xf32>
    %237 = vector.shape_cast %236 : vector<1x8x128xf32> to vector<8x128xf32>
    %cst_151 = arith.constant 0.142857149 : f32
    %238 = vector.broadcast %cst_151 : f32 to vector<8x128xf32>
    %239 = arith.mulf %231, %238 : vector<8x128xf32>
    %cst_152 = arith.constant 0.142857149 : f32
    %240 = vector.broadcast %cst_152 : f32 to vector<8x128xf32>
    %241 = arith.mulf %233, %240 : vector<8x128xf32>
    %cst_153 = arith.constant 5.000000e-01 : f32
    %242 = vector.broadcast %cst_153 : f32 to vector<8x128xf32>
    %243 = arith.mulf %242, %235 : vector<8x128xf32>
    %244 = arith.subf %239, %243 : vector<8x128xf32>
    %cst_154 = arith.constant 5.000000e-01 : f32
    %245 = vector.broadcast %cst_154 : f32 to vector<8x128xf32>
    %246 = arith.mulf %245, %235 : vector<8x128xf32>
    %247 = arith.addf %239, %246 : vector<8x128xf32>
    %cst_155 = arith.constant 5.000000e-01 : f32
    %248 = vector.broadcast %cst_155 : f32 to vector<8x128xf32>
    %249 = arith.mulf %248, %237 : vector<8x128xf32>
    %250 = arith.subf %241, %249 : vector<8x128xf32>
    %cst_156 = arith.constant 5.000000e-01 : f32
    %251 = vector.broadcast %cst_156 : f32 to vector<8x128xf32>
    %252 = arith.mulf %251, %237 : vector<8x128xf32>
    %253 = arith.addf %241, %252 : vector<8x128xf32>
    %254 = arith.minimumf %247, %171 : vector<8x128xf32>
    %255 = arith.maximumf %244, %168 : vector<8x128xf32>
    %256 = arith.subf %254, %255 : vector<8x128xf32>
    %cst_157 = arith.constant 0.000000e+00 : f32
    %257 = vector.broadcast %cst_157 : f32 to vector<8x128xf32>
    %258 = arith.maximumf %256, %257 : vector<8x128xf32>
    %259 = arith.minimumf %253, %177 : vector<8x128xf32>
    %260 = arith.maximumf %250, %174 : vector<8x128xf32>
    %261 = arith.subf %259, %260 : vector<8x128xf32>
    %cst_158 = arith.constant 0.000000e+00 : f32
    %262 = vector.broadcast %cst_158 : f32 to vector<8x128xf32>
    %263 = arith.maximumf %261, %262 : vector<8x128xf32>
    %264 = arith.mulf %258, %263 : vector<8x128xf32>
    %265 = arith.subf %247, %244 : vector<8x128xf32>
    %266 = arith.subf %253, %250 : vector<8x128xf32>
    %267 = arith.mulf %265, %266 : vector<8x128xf32>
    %268 = arith.addf %267, %180 : vector<8x128xf32>
    %269 = arith.subf %268, %264 : vector<8x128xf32>
    %cst_159 = arith.constant 0.000000e+00 : f32
    %270 = vector.broadcast %cst_159 : f32 to vector<8x128xf32>
    %271 = arith.cmpf ogt, %269, %270 : vector<8x128xf32>
    %cst_160 = arith.constant 1.000000e+00 : f32
    %272 = vector.broadcast %cst_160 : f32 to vector<8x128xf32>
    %273 = arith.select %271, %269, %272 : vector<8x128xi1>, vector<8x128xf32>
    %cst_161 = arith.constant 0.000000e+00 : f32
    %274 = vector.broadcast %cst_161 : f32 to vector<8x128xf32>
    %275 = arith.cmpf ogt, %269, %274 : vector<8x128xf32>
    %276 = arith.divf %264, %273 : vector<8x128xf32>
    %cst_162 = arith.constant 0.000000e+00 : f32
    %277 = vector.broadcast %cst_162 : f32 to vector<8x128xf32>
    %278 = arith.select %275, %276, %277 : vector<8x128xi1>, vector<8x128xf32>
    %279 = arith.maximumf %229, %278 : vector<8x128xf32>
    %false = arith.constant false
    %280 = vector.broadcast %false : i1 to vector<8x128xi1>
    %281 = arith.cmpf oeq, %229, %279 : vector<8x128xf32>
    %cst_163 = arith.constant dense<true> : vector<8x128xi1>
    %282 = arith.xori %280, %cst_163 : vector<8x128xi1>
    %283 = arith.andi %281, %282 : vector<8x128xi1>
    %284 = arith.ori %280, %283 : vector<8x128xi1>
    %285 = arith.cmpf oeq, %278, %279 : vector<8x128xf32>
    %cst_164 = arith.constant dense<true> : vector<8x128xi1>
    %286 = arith.xori %284, %cst_164 : vector<8x128xi1>
    %287 = arith.andi %285, %286 : vector<8x128xi1>
    %c0_165 = arith.constant 0 : index
    %c0_166 = arith.constant 0 : index
    %c0_167 = arith.constant 0 : index
    %288 = vector.load %arg1[%c0_165, %c0_166, %c0_167] : memref<32x8x128xf32, #tpu.memory_space<vmem>>, vector<1x8x128xf32>
    %289 = vector.shape_cast %288 : vector<1x8x128xf32> to vector<8x128xf32>
    %c1_168 = arith.constant 1 : index
    %c0_169 = arith.constant 0 : index
    %c0_170 = arith.constant 0 : index
    %290 = vector.load %arg1[%c1_168, %c0_169, %c0_170] : memref<32x8x128xf32, #tpu.memory_space<vmem>>, vector<1x8x128xf32>
    %291 = vector.shape_cast %290 : vector<1x8x128xf32> to vector<8x128xf32>
    %c2_171 = arith.constant 2 : index
    %c0_172 = arith.constant 0 : index
    %c0_173 = arith.constant 0 : index
    %292 = vector.load %arg1[%c2_171, %c0_172, %c0_173] : memref<32x8x128xf32, #tpu.memory_space<vmem>>, vector<1x8x128xf32>
    %293 = vector.shape_cast %292 : vector<1x8x128xf32> to vector<8x128xf32>
    %c3_174 = arith.constant 3 : index
    %c0_175 = arith.constant 0 : index
    %c0_176 = arith.constant 0 : index
    %294 = vector.load %arg1[%c3_174, %c0_175, %c0_176] : memref<32x8x128xf32, #tpu.memory_space<vmem>>, vector<1x8x128xf32>
    %295 = vector.shape_cast %294 : vector<1x8x128xf32> to vector<8x128xf32>
    %c4_177 = arith.constant 4 : index
    %c0_178 = arith.constant 0 : index
    %c0_179 = arith.constant 0 : index
    %296 = vector.load %arg1[%c4_177, %c0_178, %c0_179] : memref<32x8x128xf32, #tpu.memory_space<vmem>>, vector<1x8x128xf32>
    %297 = vector.shape_cast %296 : vector<1x8x128xf32> to vector<8x128xf32>
    %c0_180 = arith.constant 0 : index
    %c0_181 = arith.constant 0 : index
    %c0_182 = arith.constant 0 : index
    %298 = vector.load %arg2[%c0_180, %c0_181, %c0_182] : memref<32x8x128xf32, #tpu.memory_space<vmem>>, vector<1x8x128xf32>
    %299 = vector.shape_cast %298 : vector<1x8x128xf32> to vector<8x128xf32>
    %c1_183 = arith.constant 1 : index
    %c0_184 = arith.constant 0 : index
    %c0_185 = arith.constant 0 : index
    %300 = vector.load %arg2[%c1_183, %c0_184, %c0_185] : memref<32x8x128xf32, #tpu.memory_space<vmem>>, vector<1x8x128xf32>
    %301 = vector.shape_cast %300 : vector<1x8x128xf32> to vector<8x128xf32>
    %c2_186 = arith.constant 2 : index
    %c0_187 = arith.constant 0 : index
    %c0_188 = arith.constant 0 : index
    %302 = vector.load %arg2[%c2_186, %c0_187, %c0_188] : memref<32x8x128xf32, #tpu.memory_space<vmem>>, vector<1x8x128xf32>
    %303 = vector.shape_cast %302 : vector<1x8x128xf32> to vector<8x128xf32>
    %c3_189 = arith.constant 3 : index
    %c0_190 = arith.constant 0 : index
    %c0_191 = arith.constant 0 : index
    %304 = vector.load %arg2[%c3_189, %c0_190, %c0_191] : memref<32x8x128xf32, #tpu.memory_space<vmem>>, vector<1x8x128xf32>
    %305 = vector.shape_cast %304 : vector<1x8x128xf32> to vector<8x128xf32>
    %c4_192 = arith.constant 4 : index
    %c0_193 = arith.constant 0 : index
    %c0_194 = arith.constant 0 : index
    %306 = vector.load %arg2[%c4_192, %c0_193, %c0_194] : memref<32x8x128xf32, #tpu.memory_space<vmem>>, vector<1x8x128xf32>
    %307 = vector.shape_cast %306 : vector<1x8x128xf32> to vector<8x128xf32>
    %308 = arith.subf %297, %307 : vector<8x128xf32>
    %309 = arith.mulf %11, %308 : vector<8x128xf32>
    %310 = arith.mulf %309, %308 : vector<8x128xf32>
    %311 = arith.addf %153, %310 : vector<8x128xf32>
    %312 = arith.andi %3, %283 : vector<8x128xi1>
    %313 = arith.subf %289, %299 : vector<8x128xf32>
    %314 = arith.mulf %313, %313 : vector<8x128xf32>
    %315 = arith.subf %291, %301 : vector<8x128xf32>
    %316 = arith.mulf %315, %315 : vector<8x128xf32>
    %317 = arith.addf %314, %316 : vector<8x128xf32>
    %318 = math.sqrt %293 : vector<8x128xf32>
    %319 = math.sqrt %303 : vector<8x128xf32>
    %320 = arith.subf %318, %319 : vector<8x128xf32>
    %321 = arith.mulf %320, %320 : vector<8x128xf32>
    %322 = math.sqrt %295 : vector<8x128xf32>
    %323 = math.sqrt %305 : vector<8x128xf32>
    %324 = arith.subf %322, %323 : vector<8x128xf32>
    %325 = arith.mulf %324, %324 : vector<8x128xf32>
    %326 = arith.addf %321, %325 : vector<8x128xf32>
    %327 = arith.addf %317, %326 : vector<8x128xf32>
    %cst_195 = arith.constant 0.000000e+00 : f32
    %328 = vector.broadcast %cst_195 : f32 to vector<8x128xf32>
    %329 = arith.select %312, %327, %328 : vector<8x128xi1>, vector<8x128xf32>
    %cst_196 = arith.constant 5.000000e+00 : f32
    %330 = vector.broadcast %cst_196 : f32 to vector<8x128xf32>
    %331 = arith.mulf %330, %329 : vector<8x128xf32>
    %332 = arith.addf %311, %331 : vector<8x128xf32>
    %333 = arith.subf %297, %279 : vector<8x128xf32>
    %cst_197 = arith.constant 2.000000e+00 : f32
    %334 = vector.broadcast %cst_197 : f32 to vector<8x128xf32>
    %335 = arith.mulf %334, %333 : vector<8x128xf32>
    %336 = arith.mulf %335, %333 : vector<8x128xf32>
    %337 = arith.mulf %297, %297 : vector<8x128xf32>
    %338 = arith.select %283, %336, %337 : vector<8x128xi1>, vector<8x128xf32>
    %339 = arith.mulf %5, %338 : vector<8x128xf32>
    %340 = arith.addf %332, %339 : vector<8x128xf32>
    %c5_198 = arith.constant 5 : index
    %c0_199 = arith.constant 0 : index
    %c0_200 = arith.constant 0 : index
    %341 = vector.load %arg1[%c5_198, %c0_199, %c0_200] : memref<32x8x128xf32, #tpu.memory_space<vmem>>, vector<1x8x128xf32>
    %342 = vector.shape_cast %341 : vector<1x8x128xf32> to vector<8x128xf32>
    %c6_201 = arith.constant 6 : index
    %c0_202 = arith.constant 0 : index
    %c0_203 = arith.constant 0 : index
    %343 = vector.load %arg1[%c6_201, %c0_202, %c0_203] : memref<32x8x128xf32, #tpu.memory_space<vmem>>, vector<1x8x128xf32>
    %344 = vector.shape_cast %343 : vector<1x8x128xf32> to vector<8x128xf32>
    %c7_204 = arith.constant 7 : index
    %c0_205 = arith.constant 0 : index
    %c0_206 = arith.constant 0 : index
    %345 = vector.load %arg1[%c7_204, %c0_205, %c0_206] : memref<32x8x128xf32, #tpu.memory_space<vmem>>, vector<1x8x128xf32>
    %346 = vector.shape_cast %345 : vector<1x8x128xf32> to vector<8x128xf32>
    %c8_207 = arith.constant 8 : index
    %c0_208 = arith.constant 0 : index
    %c0_209 = arith.constant 0 : index
    %347 = vector.load %arg1[%c8_207, %c0_208, %c0_209] : memref<32x8x128xf32, #tpu.memory_space<vmem>>, vector<1x8x128xf32>
    %348 = vector.shape_cast %347 : vector<1x8x128xf32> to vector<8x128xf32>
    %c9 = arith.constant 9 : index
    %c0_210 = arith.constant 0 : index
    %c0_211 = arith.constant 0 : index
    %349 = vector.load %arg1[%c9, %c0_210, %c0_211] : memref<32x8x128xf32, #tpu.memory_space<vmem>>, vector<1x8x128xf32>
    %350 = vector.shape_cast %349 : vector<1x8x128xf32> to vector<8x128xf32>
    %c5_212 = arith.constant 5 : index
    %c0_213 = arith.constant 0 : index
    %c0_214 = arith.constant 0 : index
    %351 = vector.load %arg2[%c5_212, %c0_213, %c0_214] : memref<32x8x128xf32, #tpu.memory_space<vmem>>, vector<1x8x128xf32>
    %352 = vector.shape_cast %351 : vector<1x8x128xf32> to vector<8x128xf32>
    %c6_215 = arith.constant 6 : index
    %c0_216 = arith.constant 0 : index
    %c0_217 = arith.constant 0 : index
    %353 = vector.load %arg2[%c6_215, %c0_216, %c0_217] : memref<32x8x128xf32, #tpu.memory_space<vmem>>, vector<1x8x128xf32>
    %354 = vector.shape_cast %353 : vector<1x8x128xf32> to vector<8x128xf32>
    %c7_218 = arith.constant 7 : index
    %c0_219 = arith.constant 0 : index
    %c0_220 = arith.constant 0 : index
    %355 = vector.load %arg2[%c7_218, %c0_219, %c0_220] : memref<32x8x128xf32, #tpu.memory_space<vmem>>, vector<1x8x128xf32>
    %356 = vector.shape_cast %355 : vector<1x8x128xf32> to vector<8x128xf32>
    %c8_221 = arith.constant 8 : index
    %c0_222 = arith.constant 0 : index
    %c0_223 = arith.constant 0 : index
    %357 = vector.load %arg2[%c8_221, %c0_222, %c0_223] : memref<32x8x128xf32, #tpu.memory_space<vmem>>, vector<1x8x128xf32>
    %358 = vector.shape_cast %357 : vector<1x8x128xf32> to vector<8x128xf32>
    %c9_224 = arith.constant 9 : index
    %c0_225 = arith.constant 0 : index
    %c0_226 = arith.constant 0 : index
    %359 = vector.load %arg2[%c9_224, %c0_225, %c0_226] : memref<32x8x128xf32, #tpu.memory_space<vmem>>, vector<1x8x128xf32>
    %360 = vector.shape_cast %359 : vector<1x8x128xf32> to vector<8x128xf32>
    %361 = arith.subf %350, %360 : vector<8x128xf32>
    %362 = arith.mulf %11, %361 : vector<8x128xf32>
    %363 = arith.mulf %362, %361 : vector<8x128xf32>
    %364 = arith.addf %340, %363 : vector<8x128xf32>
    %365 = arith.andi %3, %287 : vector<8x128xi1>
    %366 = arith.subf %342, %352 : vector<8x128xf32>
    %367 = arith.mulf %366, %366 : vector<8x128xf32>
    %368 = arith.subf %344, %354 : vector<8x128xf32>
    %369 = arith.mulf %368, %368 : vector<8x128xf32>
    %370 = arith.addf %367, %369 : vector<8x128xf32>
    %371 = math.sqrt %346 : vector<8x128xf32>
    %372 = math.sqrt %356 : vector<8x128xf32>
    %373 = arith.subf %371, %372 : vector<8x128xf32>
    %374 = arith.mulf %373, %373 : vector<8x128xf32>
    %375 = math.sqrt %348 : vector<8x128xf32>
    %376 = math.sqrt %358 : vector<8x128xf32>
    %377 = arith.subf %375, %376 : vector<8x128xf32>
    %378 = arith.mulf %377, %377 : vector<8x128xf32>
    %379 = arith.addf %374, %378 : vector<8x128xf32>
    %380 = arith.addf %370, %379 : vector<8x128xf32>
    %cst_227 = arith.constant 0.000000e+00 : f32
    %381 = vector.broadcast %cst_227 : f32 to vector<8x128xf32>
    %382 = arith.select %365, %380, %381 : vector<8x128xi1>, vector<8x128xf32>
    %cst_228 = arith.constant 5.000000e+00 : f32
    %383 = vector.broadcast %cst_228 : f32 to vector<8x128xf32>
    %384 = arith.mulf %383, %382 : vector<8x128xf32>
    %385 = arith.addf %364, %384 : vector<8x128xf32>
    %386 = arith.subf %350, %279 : vector<8x128xf32>
    %cst_229 = arith.constant 2.000000e+00 : f32
    %387 = vector.broadcast %cst_229 : f32 to vector<8x128xf32>
    %388 = arith.mulf %387, %386 : vector<8x128xf32>
    %389 = arith.mulf %388, %386 : vector<8x128xf32>
    %390 = arith.mulf %350, %350 : vector<8x128xf32>
    %391 = arith.select %287, %389, %390 : vector<8x128xi1>, vector<8x128xf32>
    %392 = arith.mulf %5, %391 : vector<8x128xf32>
    %393 = arith.addf %385, %392 : vector<8x128xf32>
    %c0_230 = arith.constant 0 : index
    %c0_231 = arith.constant 0 : index
    %c0_232 = arith.constant 0 : index
    %394 = vector.load %arg3[%c0_230, %c0_231, %c0_232] : memref<1x8x128xf32, #tpu.memory_space<vmem>>, vector<1x8x128xf32>
    %395 = vector.shape_cast %394 : vector<1x8x128xf32> to vector<8x128xf32>
    %396 = vector.shape_cast %393 : vector<8x128xf32> to vector<1x8x128xf32>
    tpu.vector_store %arg3[%c0_230, %c0_231, %c0_232], %396 {strides = array<i32>} : memref<1x8x128xf32, #tpu.memory_space<vmem>>, vector<1x8x128xf32>,
    return
  }
  func.func @transform_0(%arg0: i32) -> (i32, i32, i32) {
    %c0_i32 = arith.constant 0 : i32
    %c0_i32_0 = arith.constant 0 : i32
    %c0_i32_1 = arith.constant 0 : i32
    return %c0_i32, %arg0, %c0_i32_0 : i32, i32, i32
  }
  func.func @transform_1(%arg0: i32) -> (i32, i32, i32) {
    %c0_i32 = arith.constant 0 : i32
    %c0_i32_0 = arith.constant 0 : i32
    %c0_i32_1 = arith.constant 0 : i32
    return %c0_i32, %arg0, %c0_i32_0 : i32, i32, i32
  }
  func.func @transform_2(%arg0: i32) -> (i32, i32, i32) {
    %c0_i32 = arith.constant 0 : i32
    %c0_i32_0 = arith.constant 0 : i32
    %c0_i32_1 = arith.constant 0 : i32
    return %arg0, %c0_i32, %c0_i32_0 : i32, i32, i32
  }
}

</mosaic_0001>

<bundles_post_ra>
// kernel: tpu_custom_call.1
= control target key start
LH: loop header
LB: loop body
LE: loop exit
PB: predicated region body
PF: predicated region fallthrough
CT: control target
= control target key end

     0   :  { %7 = vsyncpa [#allocation3], 0  ;;  %s801_s0 = inlined_call_operand.hbm [shape: f32[32,8,128], index: 0, kind: input, shape index: {}]   ;;  %s802_s1 = inlined_call_operand.hbm [shape: f32[32,8,128], index: 1, kind: input, shape index: {}]   ;;  %s803_s2 = inlined_call_operand.hbm [shape: f32[1,8,128], index: 2, kind: output, shape index: {}]  }
   0x1   :  { %8 = vsyncpa [#allocation6], 0 }
   0x2   :  { %9 = vsyncpa [#allocation4], 0  ;;  %s522_s9 = smov [#allocation2]   ;;  %s450_s13 = scalar_lea.hbm %s801_s0, 4096 }
   0x3   :  { %s15_s10 = sshll.u32 %s522_s9, 4  ;;  %p451_p0 = scmp.ne.s32.totalorder %s801_s0, %s450_s13  ;;  %s16_s10 = int_to_ptr.vmem [resolvable:$true] %s15_s10 }
   0x4   :  { %p454_p1 = scmp.lt.u32.totalorder %s450_s13, %s801_s0 }
   0x6   :  { %p456_p2 = pnand %p454_p1, %p451_p0 }
   0x8   :  { %459 = shalt.err (!%p456_p2)
}
   0x9   :  { %s460_s18 = scalar_lea.vmem %s16_s10, 4096  ;;  %p465_p4 = scmp.lt.s32.totalorder %s16_s10, %s16_s10 }
   0xa   :  { %p461_p3 = scmp.ne.s32.totalorder %s16_s10, %s460_s18  ;;  %p466_p5 = scmp.lt.s32.totalorder %s460_s18, %s460_s18 }
   0xc   :  { %p467_p6 = por %p466_p5, %p465_p4 }
   0xe   :  { %p468_p7 = pnand %p467_p6, %p461_p3 }
  0x10   :  { %471 = shalt.err (!%p468_p7)
}
  0x11   :  { %s523_s19 = smov 128   ;;  %s524_s20 = smov 8  }
  0x12   :  { %21 = dma.hbm_to_vmem [thread:$0]  %s801_s0, 4096, %s16_s10, [#allocation3], %s523_s19, %s523_s19, %s524_s20  }
  0x13   :  { %s525_s23 = smov [#allocation5]   ;;  %s472_s27 = scalar_lea.hbm %s802_s1, 4096 }
  0x14   :  { %s27_s24 = sshll.u32 %s525_s23, 4  ;;  %p473_p8 = scmp.ne.s32.totalorder %s802_s1, %s472_s27  ;;  %s28_s24 = int_to_ptr.vmem [resolvable:$true] %s27_s24 }
  0x15   :  { %p476_p9 = scmp.lt.u32.totalorder %s472_s27, %s802_s1 }
  0x17   :  { %p478_p10 = pnand %p476_p9, %p473_p8 }
  0x19   :  { %481 = shalt.err (!%p478_p10)
}
  0x1a   :  { %s482_s4 = scalar_lea.vmem %s28_s24, 4096  ;;  %p487_p12 = scmp.lt.s32.totalorder %s28_s24, %s28_s24 }
  0x1b   :  { %p483_p11 = scmp.ne.s32.totalorder %s28_s24, %s482_s4  ;;  %p488_p13 = scmp.lt.s32.totalorder %s482_s4, %s482_s4 }
  0x1d   :  { %p489_p0 = por %p488_p13, %p487_p12 }
  0x1f   :  { %p490_p1 = pnand %p489_p0, %p483_p11 }
  0x21   :  { %493 = shalt.err (!%p490_p1)
}
  0x22   :  { %33 = dma.hbm_to_vmem [thread:$0]  %s802_s1, 4096, %s28_s24, [#allocation6], %s523_s19, %s523_s19, %s524_s20  }
  0x23   :  { %516 = dma.done.wait [#allocation3], 4096  }
  0x24   :  { %517 = vsyncadd [#allocation3], 4294963200 }
  0x25   :  { %518 = dma.done.wait [#allocation6], 4096  }
  0x26   :  { %519 = vsyncadd [#allocation6], 4294963200  ;;  %v50_v0 = vld [vmem:[#allocation2 + $0x50] sm:$0xff]  ;;  %v57_v3 = vld [vmem:[#allocation2 + $0x58] sm:$0xff]  ;;  %v526_v52 = vmov 0.0   ;;  %s528_s1 = smov [#allocation7]  }
  0x27   :  { %v52_v1 = vld [vmem:[#allocation5 + $0x50] sm:$0xff]  ;;  %v59_v4 = vld [vmem:[#allocation5 + $0x58] sm:$0xff]  ;;  %v64_v5 = vld [vmem:[#allocation2 + $0x60] sm:$0xff]  ;;  %s411_s6 = sshll.u32 %s528_s1, 4  ;;  %s412_s6 = int_to_ptr.vmem [resolvable:$true] %s411_s6 }
  0x28   :  { %v53_v2 = vsub.f32 %v50_v0, %v52_v1  ;;  %v60_v6 = vsub.f32 %v57_v3, %v59_v4  ;;  %v66_v7 = vld [vmem:[#allocation5 + $0x60] sm:$0xff]  ;;  %v71_v8 = vld [vmem:[#allocation2 + $0x68] sm:$0xff]  ;;  %v78_v14 = vld [vmem:[#allocation2 + $0x70] sm:$0xff]  ;;  %s494_s7 = scalar_lea.vmem %s412_s6, 128  ;;  %p499_p3 = scmp.lt.s32.totalorder %s412_s6, %s412_s6 }
  0x29   :  { %v73_v9 = vld [vmem:[#allocation5 + $0x68] sm:$0xff]  ;;  %v568_v10 = vld [vmem:[#allocation5 + $0x20] sm:$0xff]  ;;  %v67_v12 = vsub.f32 %v64_v5, %v66_v7  ;;  %v80_v15 = vld [vmem:[#allocation5 + $0x70] sm:$0xff]  ;;  %p495_p2 = scmp.ne.s32.totalorder %s412_s6, %s494_s7  ;;  %p500_p4 = scmp.lt.s32.totalorder %s494_s7, %s494_s7 }
  0x2a   :  { %v54_v11 = vmul.f32 %v53_v2, %v53_v2  ;;  %v74_v13 = vsub.f32 %v71_v8, %v73_v9  ;;  %v85_v16 = vld [vmem:[#allocation2 + $0x78] sm:$0xff]  ;;  %v61_v17 = vmul.f32 %v60_v6, %v60_v6  ;;  %v81_v18 = vsub.f32 %v78_v14, %v80_v15  ;;  %v92_v20 = vld [vmem:[#allocation2 + $0x80] sm:$0xff]  ;;  %v99_v23 = vld [vmem:[#allocation2 + $0x88] sm:$0xff] }
  0x2b   :  { %v87_v19 = vld [vmem:[#allocation5 + $0x78] sm:$0xff]  ;;  %v94_v21 = vld [vmem:[#allocation5 + $0x80] sm:$0xff]  ;;  %v68_v22 = vmul.f32 %v67_v12, %v67_v12  ;;  %v101_v24 = vld [vmem:[#allocation5 + $0x88] sm:$0xff]  ;;  %vm45_vm0 = vcmp.eq.f32.partialorder %v568_v10, 0.0  ;;  %vm42_vm2 = vcmp.gt.f32.partialorder %v568_v10, 0.0  ;;  %p501_p5 = por %p500_p4, %p499_p3 }
  0x2c   :  { %v106_v25 = vld [vmem:[#allocation2 + $0x90] sm:$0xff]  ;;  %v62_v26 = vadd.f32 %v61_v17, %v54_v11  ;;  %v75_v27 = vmul.f32 %v74_v13, %v74_v13  ;;  %v88_v28 = vsub.f32 %v85_v16, %v87_v19  ;;  %v113_v30 = vld [vmem:[#allocation2 + $0x98] sm:$0xff]  ;;  %v120_v32 = vld [vmem:[#allocation2 + $0xa0] sm:$0xff]  ;;  %v82_v36 = vmul.f32 %v81_v18, %v81_v18 }
  0x2d   :  { %v108_v29 = vld [vmem:[#allocation5 + $0x90] sm:$0xff]  ;;  %v115_v31 = vld [vmem:[#allocation5 + $0x98] sm:$0xff]  ;;  %v122_v33 = vld [vmem:[#allocation5 + $0xa0] sm:$0xff]  ;;  %v95_v37 = vsub.f32 %v92_v20, %v94_v21  ;;  %v102_v41 = vsub.f32 %v99_v23, %v101_v24  ;;  %v574_v53 = vsel %vm45_vm0, 1.0, %v526_v52  ;;  %p502_p6 = pnand %p501_p5, %p495_p2 }
  0x2e   :  { %v127_v34 = vld [vmem:[#allocation2 + $0xa8] sm:$0xff]  ;;  %v69_v35 = vadd.f32 %v68_v22, %v62_v26  ;;  %v134_v39 = vld [vmem:[#allocation2 + $0xb0] sm:$0xff]  ;;  %v109_v42 = vsub.f32 %v106_v25, %v108_v29  ;;  %v116_v43 = vsub.f32 %v113_v30, %v115_v31  ;;  %v123_v44 = vsub.f32 %v120_v32, %v122_v33  ;;  %v141_v45 = vld [vmem:[#allocation2 + $0xb8] sm:$0xff] }
  0x2f   :  { %v129_v38 = vld [vmem:[#allocation5 + $0xa8] sm:$0xff]  ;;  %v136_v40 = vld [vmem:[#allocation5 + $0xb0] sm:$0xff]  ;;  %v143_v46 = vld [vmem:[#allocation5 + $0xb8] sm:$0xff]  ;;  %v89_v48 = vmul.f32 %v88_v28, %v88_v28  ;;  %v96_v55 = vmul.f32 %v95_v37, %v95_v37  ;;  %v103_v60 = vmul.f32 %v102_v41, %v102_v41 }
  0x30   :  { %v76_v47 = vadd.f32 %v75_v27, %v69_v35  ;;  %v130_v49 = vsub.f32 %v127_v34, %v129_v38  ;;  %v137_v50 = vsub.f32 %v134_v39, %v136_v40  ;;  %v148_v51 = vld [vmem:[#allocation2 + $0xc0] sm:$0xff]  ;;  %v144_v56 = vsub.f32 %v141_v45, %v143_v46  ;;  %v155_v58 = vld [vmem:[#allocation2 + $0xc8] sm:$0xff]  ;;  %v582_v5 = vld [vmem:[#allocation5 + $0x10] sm:$0xff] }
  0x31   :  { %v150_v57 = vld [vmem:[#allocation5 + $0xc0] sm:$0xff]  ;;  %v157_v59 = vld [vmem:[#allocation5 + $0xc8] sm:$0xff]  ;;  %v110_v61 = vmul.f32 %v109_v42, %v109_v42  ;;  %v117_v62 = vmul.f32 %v116_v43, %v116_v43  ;;  %v124_v63 = vmul.f32 %v123_v44, %v123_v44  ;;  %v584_v6 = vld [vmem:[#allocation5 + $0x18] sm:$0xff]  ;;  %v199_v12 = vmul.f32 0.5, %v582_v5 }
  0x32   :  { %v83_v54 = vadd.f32 %v82_v36, %v76_v47  ;;  %v576_v0 = vld [vmem:[#allocation5] sm:$0xff]  ;;  %v131_v2 = vmul.f32 %v130_v49, %v130_v49  ;;  %v578_v3 = vmul.f32 %v137_v50, %v137_v50  ;;  %v580_v4 = vld [vmem:[#allocation5 + $0x8] sm:$0xff]  ;;  %v151_v8 = vsub.f32 %v148_v51, %v150_v57  ;;  %v595_v15 = vld [vmem:[#allocation2 + $0x10] sm:$0xff] }
  0x33   :  { %v197_v7 = vmul.f32 0.14285715, %v576_v0  ;;  %v587_v9 = vsub.f32 %v155_v58, %v157_v59  ;;  %v198_v11 = vmul.f32 0.14285715, %v580_v4  ;;  %v591_v13 = vld [vmem:[#allocation2] sm:$0xff]  ;;  %v593_v14 = vld [vmem:[#allocation2 + $0x8] sm:$0xff]  ;;  %v597_v17 = vmul.f32 %v144_v56, %v144_v56 }
  0x34   :  { %v90_v1 = vadd.f32 %v89_v48, %v83_v54  ;;  %v202_v18 = vmul.f32 0.5, %v584_v6  ;;  %v600_v19 = vld [vmem:[#allocation2 + $0x18] sm:$0xff]  ;;  %v215_v20 = vmul.f32 0.14285715, %v591_v13  ;;  %v603_v21 = vld [vmem:[#allocation2 + $0x28] sm:$0xff]  ;;  %v217_v25 = vmul.f32 0.5, %v595_v15 }
  0x35   :  { %v200_v22 = vsub.f32 %v197_v7, %v199_v12  ;;  %v201_v23 = vadd.f32 %v199_v12, %v197_v7  ;;  %v216_v24 = vmul.f32 0.14285715, %v593_v14  ;;  %v220_v29 = vmul.f32 0.5, %v600_v19  ;;  %v608_v30 = vld [vmem:[#allocation2 + $0x30] sm:$0xff]  ;;  %v611_v39 = vld [vmem:[#allocation2 + $0x38] sm:$0xff]  ;;  %v613_v40 = vld [vmem:[#allocation2 + $0x40] sm:$0xff] }
  0x36   :  { %v97_v16 = vadd.f32 %v96_v55, %v90_v1  ;;  %v203_v27 = vsub.f32 %v198_v11, %v202_v18  ;;  %v204_v28 = vadd.f32 %v202_v18, %v198_v11  ;;  %v218_v32 = vsub.f32 %v215_v20, %v217_v25  ;;  %v162_v41 = vld [vmem:[#allocation2 + $0xd0] sm:$0xff] }
  0x37   :  { %v205_v31 = vsub.f32 %v201_v23, %v200_v22  ;;  %v219_v33 = vadd.f32 %v217_v25, %v215_v20  ;;  %v250_v34 = vmul.f32 0.14285715, %v603_v21  ;;  %v221_v37 = vsub.f32 %v216_v24, %v220_v29  ;;  %v164_v42 = vld [vmem:[#allocation5 + $0xd0] sm:$0xff]  ;;  %v169_v20 = vld [vmem:[#allocation2 + $0xd8] sm:$0xff] }
  0x38   :  { %v104_v26 = vadd.f32 %v103_v60, %v97_v16  ;;  %v206_v36 = vsub.f32 %v204_v28, %v203_v27  ;;  %v222_v38 = vadd.f32 %v220_v29, %v216_v24  ;;  %v224_v44 = vmax.f32 %v218_v32, %v200_v22  ;;  %v171_v24 = vld [vmem:[#allocation5 + $0xd8] sm:$0xff] }
  0x39   :  { %v223_v43 = vmin.f32 %v219_v33, %v201_v23  ;;  %v232_v45 = vsub.f32 %v219_v33, %v218_v32  ;;  %v251_v46 = vmul.f32 0.14285715, %v608_v30  ;;  %v228_v50 = vmax.f32 %v221_v37, %v203_v27 }
  0x3a   :  { %v111_v35 = vadd.f32 %v110_v61, %v104_v26  ;;  %v207_v48 = vmul.f32 %v206_v36, %v205_v31  ;;  %v227_v49 = vmin.f32 %v222_v38, %v204_v28  ;;  %v233_v54 = vsub.f32 %v222_v38, %v221_v37  ;;  %v626_v37 = vld [vmem:[#allocation2 + $0x20] sm:$0xff] }
  0x3b   :  { %v225_v51 = vsub.f32 %v223_v43, %v224_v44  ;;  %v252_v55 = vmul.f32 0.5, %v611_v39  ;;  %v255_v56 = vmul.f32 0.5, %v613_v40  ;;  %v152_v58 = vmul.f32 %v151_v8, %v151_v8  ;;  %v178_v43 = vld [vmem:[#allocation5 + $0xe0] sm:$0xff]  ;;  %v185_v44 = vld [vmem:[#allocation5 + $0xe8] sm:$0xff] }
  0x3c   :  { %v118_v47 = vadd.f32 %v117_v62, %v111_v35  ;;  %v165_v59 = vsub.f32 %v162_v41, %v164_v42  ;;  %v229_v60 = vsub.f32 %v227_v49, %v228_v50  ;;  %v234_v1 = vmul.f32 %v233_v54, %v232_v45 }
  0x3d   :  { %v226_v61 = vmax.f32 %v225_v51, 0.0  ;;  %v253_v7 = vsub.f32 %v250_v34, %v252_v55  ;;  %v254_v11 = vadd.f32 %v252_v55, %v250_v34  ;;  %v256_v62 = vsub.f32 %v251_v46, %v255_v56 }
  0x3e   :  { %v125_v57 = vadd.f32 %v124_v63, %v118_v47  ;;  %v230_v16 = vmax.f32 %v229_v60, 0.0  ;;  %v257_v18 = vadd.f32 %v255_v56, %v251_v46  ;;  %v235_v25 = vadd.f32 %v234_v1, %v207_v48 }
  0x3f   :  { %v258_v26 = vmin.f32 %v254_v11, %v201_v23  ;;  %v259_v29 = vmax.f32 %v253_v7, %v200_v22  ;;  %v267_v31 = vsub.f32 %v254_v11, %v253_v7  ;;  %v263_v33 = vmax.f32 %v256_v62, %v203_v27  ;;  %v665_v11 = vld [vmem:[#allocation5 + $0x38] sm:$0xff] }
  0x40   :  { %v132_v12 = vadd.f32 %v131_v2, %v125_v57  ;;  %v619_v63 = vmul.f32 %v230_v16, %v226_v61  ;;  %v262_v8 = vmin.f32 %v257_v18, %v204_v28  ;;  %v622_v35 = vmul.f32 0.5, %v574_v53  ;;  %v176_v28 = vld [vmem:[#allocation2 + $0xe0] sm:$0xff] }
  0x41   :  { %v159_v2 = vmul.f32 %v587_v9, %v587_v9  ;;  %v260_v34 = vsub.f32 %v258_v26, %v259_v29  ;;  %v268_v36 = vsub.f32 %v257_v18, %v256_v62  ;;  %v172_v22 = vsub.f32 %v169_v20, %v171_v24  ;;  %v183_v9 = vld [vmem:[#allocation2 + $0xe8] sm:$0xff]  ;;  %v343_v24 = vld [vmem:[#allocation5 + $0x30] sm:$0xff] }
  0x42   :  { %v139_v32 = vadd.f32 %v578_v3, %v132_v12  ;;  %v630_v38 = vsub.f32 %v235_v25, %v619_v63  ;;  %v264_v3 = vsub.f32 %v262_v8, %v263_v33  ;;  %v166_v41 = vmul.f32 %v165_v59, %v165_v59  ;;  %v341_v20 = vld [vmem:[#allocation5 + $0x28] sm:$0xff]  ;;  %v687_v33 = vld [vmem:[#allocation5 + $0x40] sm:$0xff] }
  0x43   :  { %v261_v27 = vmax.f32 %v260_v34, 0.0  ;;  %v269_v42 = vmul.f32 %v268_v36, %v267_v31  ;;  %430 = vrsqrt.f32 %v595_v15  ;;  %v289_v49 = vsub.f32 %v591_v13, %v576_v0  ;;  %v679_v26 = vld [vmem:[#allocation2 + $0x48] sm:$0xff] }
  0x44   :  { %v146_v23 = vadd.f32 %v597_v17, %v139_v32  ;;  %vm237_vm1 = vcmp.gt.f32.partialorder %v630_v38, 0.0  ;;  %v265_v45 = vmax.f32 %v264_v3, 0.0  ;;  %v284_v17 = vsub.f32 %v626_v37, %v568_v10  ;;  %v349_v29 = vld [vmem:[#allocation5 + $0x48] sm:$0xff] }
  0x45   :  { %v238_v46 = vsel %vm237_vm1, %v630_v38, 1.0  ;;  %v270_v47 = vadd.f32 %v269_v42, %v207_v48  ;;  %v291_v50 = vsub.f32 %v593_v14, %v580_v4  ;;  %v173_v55 = vmul.f32 %v172_v22, %v172_v22 }
  0x46   :  { %v153_v53 = vadd.f32 %v152_v58, %v146_v23  ;;  %432 = vrcp.f32 %v238_v46  ;;  %v644_v54 = vmul.f32 %v265_v45, %v261_v27  ;;  %v179_v56 = vsub.f32 %v176_v28, %v178_v43 }
  0x47   :  { %v186_v57 = vsub.f32 %v183_v9, %v185_v44  ;;  %434 = vrsqrt.f32 %v582_v5  ;;  %v285_v0 = vmul.f32 %v284_v17, %v622_v35  ;;  %v290_v4 = vmul.f32 %v289_v49, %v289_v49 }
  0x48   :  { %v160_v51 = vadd.f32 %v159_v2, %v153_v53  ;;  %v648_v48 = vsub.f32 %v270_v47, %v644_v54  ;;  %436 = vrsqrt.f32 %v600_v19  ;;  %v292_v13 = vmul.f32 %v291_v50, %v291_v50 }
  0x49   :  { %438 = vrsqrt.f32 %v584_v6  ;;  %v657_v14 = vsel %vm42_vm2, 1.0, %v526_v52  ;;  %v180_v59 = vmul.f32 %v179_v56, %v179_v56  ;;  %v187_v60 = vmul.f32 %v186_v57, %v186_v57 }
  0x4a   :  { %v167_v58 = vadd.f32 %v166_v41, %v160_v51  ;;  %vm272_vm3 = vcmp.gt.f32.partialorder %v648_v48, 0.0  ;;  %v662_v7 = vmul.f32 %v285_v0, %v284_v17  ;;  %vm296_vm4 = vcmp.eq.f32.partialorder %v595_v15, inf }
  0x4b   :  { %v273_v61 = vsel %vm272_vm3, %v648_v48, 1.0  ;;  %v667_v16 = vadd.f32 %v292_v13, %v290_v4  ;;  %vm298_vm5 = vcmp.eq.f32.partialorder %v595_v15, 0.0  ;;  %v299_v52 = vand.u32 2147483648, %v595_v15 }
  0x4c   :  { %v174_v1 = vadd.f32 %v173_v55, %v167_v58  ;;  %440 = vrcp.f32 %v273_v61  ;;  %vm303_vm6 = vcmp.eq.f32.partialorder %v582_v5, inf  ;;  %vm305_vm7 = vcmp.eq.f32.partialorder %v582_v5, 0.0 }
  0x4d   :  { %v431_v12 = vpop.eup %430  ;;  %442 = vrsqrt.f32 %v611_v39  ;;  %v306_v18 = vand.u32 2147483648, %v582_v5  ;;  %vm312_vm8 = vcmp.eq.f32.partialorder %v600_v19, inf  ;;  %vm314_vm9 = vcmp.eq.f32.partialorder %v600_v19, 0.0 }
  0x4e   :  { %v295_v62 = vmul.f32 %v431_v12, %v595_v15  ;;  %v315_v25 = vand.u32 2147483648, %v600_v19  ;;  %444 = vrsqrt.f32 %v665_v11  ;;  %v181_v32 = vadd.f32 %v180_v59, %v174_v1 }
  0x4f   :  { %vm319_vm10 = vcmp.eq.f32.partialorder %v584_v6, inf  ;;  %vm321_vm11 = vcmp.eq.f32.partialorder %v584_v6, 0.0  ;;  %v322_v34 = vand.u32 2147483648, %v584_v6  ;;  %v355_v36 = vsub.f32 %v603_v21, %v341_v20 }
  0x50   :  { %v433_v31 = vpop.eup %432  ;;  %v297_v8 = vsel %vm296_vm4, %v595_v15, %v295_v62  ;;  %v357_v23 = vsub.f32 %v608_v30, %v343_v24  ;;  %446 = vrsqrt.f32 %v613_v40  ;;  %v696_v41 = vmul.f32 %v626_v37, %v626_v37 }
  0x51   :  { %v435_v2 = vpop.eup %434  ;;  %v699_v28 = vsub.f32 %v679_v26, %v349_v29  ;;  %vm362_vm12 = vcmp.eq.f32.partialorder %v611_v39, inf  ;;  %v240_v42 = vmul.f32 %v433_v31, %v619_v63  ;;  %v300_v21 = vsel %vm298_vm5, %v299_v52, %v297_v8 }
  0x52   :  { %v437_v22 = vpop.eup %436  ;;  %v302_v3 = vmul.f32 %v435_v2, %v582_v5  ;;  %448 = vrsqrt.f32 %v687_v33  ;;  %v188_v53 = vadd.f32 %v187_v60, %v181_v32  ;;  %vm364_vm13 = vcmp.eq.f32.partialorder %v611_v39, 0.0 }
  0x53   :  { %v439_v27 = vpop.eup %438  ;;  %v311_v30 = vmul.f32 %v437_v22, %v600_v19  ;;  %v717_v63 = vmul.f32 %v355_v36, %v355_v36  ;;  %v719_v45 = vmul.f32 %v357_v23, %v357_v23  ;;  %v241_v51 = vsel %vm237_vm1, %v240_v42, 0.0 }
  0x54   :  { %v304_v43 = vsel %vm303_vm6, %v582_v5, %v302_v3  ;;  %v318_v9 = vmul.f32 %v439_v27, %v584_v6  ;;  %v365_v5 = vand.u32 2147483648, %v611_v39  ;;  %vm369_vm14 = vcmp.eq.f32.partialorder %v665_v11, inf }
  0x55   :  { %v307_v44 = vsel %vm305_vm7, %v306_v18, %v304_v43  ;;  %v313_v15 = vsel %vm312_vm8, %v600_v19, %v311_v30  ;;  %v189_v19 = vmul.f32 %v657_v14, %v188_v53  ;;  %vm371_vm15 = vcmp.eq.f32.partialorder %v665_v11, 0.0 }
  0x56   :  { %v441_v17 = vpop.eup %440  ;;  %v308_v46 = vsub.f32 %v300_v21, %v307_v44  ;;  %v316_v47 = vsel %vm314_vm9, %v315_v25, %v313_v15  ;;  %v320_v49 = vsel %vm319_vm10, %v584_v6, %v318_v9  ;;  %v372_v38 = vand.u32 2147483648, %v665_v11 }
  0x57   :  { %v443_v50 = vpop.eup %442  ;;  %v275_v55 = vmul.f32 %v441_v17, %v644_v54  ;;  %v323_v56 = vsel %vm321_vm11, %v322_v34, %v320_v49  ;;  %vm378_vm0 = vcmp.eq.f32.partialorder %v613_v40, inf  ;;  %vm380_vm1 = vcmp.eq.f32.partialorder %v613_v40, 0.0 }
  0x58   :  { %v309_v57 = vmul.f32 %v308_v46, %v308_v46  ;;  %v324_v58 = vsub.f32 %v316_v47, %v323_v56  ;;  %v361_v0 = vmul.f32 %v443_v50, %v611_v39  ;;  %v445_v4 = vpop.eup %444  ;;  %v381_v48 = vand.u32 2147483648, %v613_v40 }
  0x59   :  { %v276_v13 = vsel %vm272_vm3, %v275_v55, 0.0  ;;  %v368_v60 = vmul.f32 %v445_v4, %v665_v11  ;;  %vm385_vm3 = vcmp.eq.f32.partialorder %v687_v33, inf  ;;  %vm387_vm4 = vcmp.eq.f32.partialorder %v687_v33, 0.0 }
  0x5a   :  { %v277_v6 = vmax.f32 %v241_v51, %v276_v13  ;;  %v325_v54 = vmul.f32 %v324_v58, %v324_v58  ;;  %v363_v59 = vsel %vm362_vm12, %v611_v39, %v361_v0  ;;  %v447_v61 = vpop.eup %446  ;;  %v388_v24 = vand.u32 2147483648, %v687_v33 }
  0x5b   :  { %v366_v52 = vsel %vm364_vm13, %v365_v5, %v363_v59  ;;  %v370_v18 = vsel %vm369_vm14, %v665_v11, %v368_v60  ;;  %v377_v20 = vmul.f32 %v447_v61, %v613_v40  ;;  %v287_v32 = vadd.f32 %v662_v7, %v189_v19 }
  0x5c   :  { %vm278_vm5 = vcmp.eq.f32.partialorder %v241_v51, %v277_v6  ;;  %v326_v1 = vadd.f32 %v325_v54, %v309_v57  ;;  %v331_v12 = vsub.f32 %v626_v37, %v277_v6  ;;  %v449_v62 = vpop.eup %448  ;;  %v397_v25 = vsub.f32 %v679_v26, %v277_v6 }
  0x5d   :  { %v373_v37 = vsel %vm371_vm15, %v372_v38, %v370_v18  ;;  %v384_v39 = vmul.f32 %v449_v62, %v687_v33  ;;  %vm288_vm6 = vmand %vm42_vm2, %vm278_vm5  ;;  %v379_v2 = vsel %vm378_vm0, %v613_v40, %v377_v20  ;;  %vm279_vm7 = vcmp.eq.f32.partialorder %v276_v13, %v277_v6 }
  0x5e   :  { %v327_v29 = vadd.f32 %v326_v1, %v667_v16  ;;  %v332_v31 = vmul.f32 2.0, %v331_v12  ;;  %v374_v8 = vsub.f32 %v366_v52, %v373_v37  ;;  %v398_v34 = vmul.f32 2.0, %v397_v25 }
  0x5f   :  { %v382_v11 = vsel %vm380_vm1, %v381_v48, %v379_v2  ;;  %v386_v23 = vsel %vm385_vm3, %v687_v33, %v384_v39  ;;  %vm527_vm8 = vmmov 1   ;;  %v351_v22 = vmul.f32 %v699_v28, %v622_v35 }
  0x60   :  { %v328_v36 = vsel %vm288_vm6, %v327_v29, 0.0  ;;  %v333_v16 = vmul.f32 %v332_v31, %v331_v12  ;;  %vm280_vm9 = vmxor %vm278_vm5, %vm527_vm8  ;;  %v389_v3 = vsel %vm387_vm4, %v388_v24, %v386_v23  ;;  %v375_v40 = vmul.f32 %v374_v8, %v374_v8 }
  0x61   :  { %v329_v7 = vmul.f32 5.0, %v328_v36  ;;  %v390_v42 = vsub.f32 %v382_v11, %v389_v3  ;;  %vm281_vm10 = vmand %vm279_vm7, %vm280_vm9  ;;  %v359_v53 = vadd.f32 %v719_v45, %v717_v63  ;;  %v399_v9 = vmul.f32 %v398_v34, %v397_v25 }
  0x62   :  { %v335_v27 = vsel %vm278_vm5, %v333_v16, %v696_v41  ;;  %v400_v35 = vmul.f32 %v679_v26, %v679_v26  ;;  %v352_v33 = vmul.f32 %v351_v22, %v699_v28  ;;  %vm354_vm11 = vmand %vm42_vm2, %vm281_vm10 }
  0x63   :  { %v330_v21 = vadd.f32 %v329_v7, %v287_v32  ;;  %v336_v30 = vmul.f32 %v657_v14, %v335_v27  ;;  %v391_v43 = vmul.f32 %v390_v42, %v390_v42 }
  0x64   :  { %v401_v17 = vsel %vm281_vm10, %v399_v9, %v400_v35 }
  0x65   :  { %v337_v44 = vadd.f32 %v336_v30, %v330_v21  ;;  %v392_v15 = vadd.f32 %v391_v43, %v375_v40  ;;  %v402_v5 = vmul.f32 %v657_v14, %v401_v17 }
  0x67   :  { %v393_v41 = vadd.f32 %v392_v15, %v359_v53  ;;  %v353_v46 = vadd.f32 %v352_v33, %v337_v44 }
  0x69   :  { %v394_v47 = vsel %vm354_vm11, %v393_v41, 0.0 }
  0x6a   :  { %v395_v49 = vmul.f32 5.0, %v394_v47 }
  0x6c   :  { %v396_v63 = vadd.f32 %v395_v49, %v353_v46 }
  0x6e   :  { %v403_v45 = vadd.f32 %v402_v5, %v396_v63 }
  0x70   :  { %404 = vst [vmem:[#allocation7] sm:$0xff] %v403_v45 }
  0x71   :  { %505 = shalt.err (!%p502_p6)
}
  0x72   :  { %s506_s10 = scalar_lea.hbm %s803_s2, 128 }
  0x73   :  { %p507_p7 = scmp.ne.s32.totalorder %s803_s2, %s506_s10  ;;  %p510_p8 = scmp.lt.u32.totalorder %s506_s10, %s803_s2 }
  0x75   :  { %p512_p9 = pnand %p510_p8, %p507_p7 }
  0x77   :  { %515 = shalt.err (!%p512_p9)
}
  0x78   :  { %414 = dma.vmem_to_hbm [thread:$0]  %s412_s6, 128, %s803_s2, [#allocation4]  }
  0x79   :  { %520 = dma.done.wait [#allocation4], 128  }
  0x7a   :  { %521 = vsyncadd [#allocation4], 4294967168 }
  0x7b   :  { %418 = vsyncpa [#allocation3], 1 }
  0x7c   :  { %419 = vsyncpa [#allocation6], 1 }
  0x7d   :  { %420 = vsyncpa [#allocation4], 1 }

</bundles_post_ra>
